<compile_context>
chip_gen: v7x
topology: tpu7x:2x2x1
jax: 0.10.0
libtpu: 0.0.40
codegen_flags: <defaults>
</compile_context>

<pallas_src>
import jax
import jax.numpy as jnp
from jax.experimental import pallas as pl
from jax.experimental.pallas import tpu as pltpu

# Standard ImageNet constants (crumpets IMAGENET_MEAN / IMAGENET_STD).
IMAGENET_MEAN = (0.485, 0.456, 0.406)
IMAGENET_STD = (0.229, 0.224, 0.225)

_TARGET_TILE_ELEMS = 512 * 1024   # ~2 MiB per f32 buffer -> ~8 MiB with double-buffered in+out
_MAX_TN = 8192                    # lane-axis tile cap (multiple of 128)
_MAX_TM = 1024                    # sublane-axis tile cap


def _normalize_kernel(x_ref, scale_ref, bias_ref, o_ref):
    # x_ref:     (TM, TN) input tile (any dtype; cast like x.float())
    # scale_ref: (TM, 1)  per-(n, c) 1/std, broadcast over lanes
    # bias_ref:  (TM, 1)  per-(n, c) -mean/std, broadcast over lanes
    x = x_ref[...].astype(jnp.float32)
    o_ref[...] = x * scale_ref[...] + bias_ref[...]


def _sublane_multiple(dtype):
    # f32 -> 8, bf16/f16 -> 16, int8/uint8 -> 32 (sub-32-bit dtypes pack along sublanes)
    itemsize = jnp.dtype(dtype).itemsize
    return 8 * max(1, 4 // max(itemsize, 1))


def _choose_tiles(nc, hw, sub):
    # Lane (fast) axis: multiple of 128, or the full extent when hw < 128.
    if hw < 128:
        tn = hw
    else:
        tn = min((hw // 128) * 128, _MAX_TN)
    # Sublane axis: multiple of `sub`, or the full extent when nc <= sub.
    if nc <= sub:
        tm = nc
    else:
        budget = max(sub, (_TARGET_TILE_ELEMS // max(tn, 1)) // sub * sub)
        tm = min((nc // sub) * sub, budget, _MAX_TM)
    return tm, tn


def normalize(x, mean=IMAGENET_MEAN, std=IMAGENET_STD):
    """Equivalent of Normalize.forward: ((x.float() - mean) * invstd) in NCHW, f32."""
    n, c, h, w = x.shape
    mean_c = jnp.asarray(mean, dtype=jnp.float32).reshape(-1)
    std_c = jnp.asarray(std, dtype=jnp.float32).reshape(-1)
    assert mean_c.shape == (c,) and std_c.shape == (c,)

    # Fused affine form: y = x * scale + bias.
    scale_c = 1.0 / std_c            # (C,)
    bias_c = -mean_c / std_c         # (C,)

    nc, hw = n * c, h * w
    x2d = x.reshape(nc, hw)
    # Contiguous NCHW: channel is the fast factor of the (n*c) row axis.
    scale_rows = jnp.tile(scale_c, n).reshape(nc, 1)
    bias_rows = jnp.tile(bias_c, n).reshape(nc, 1)

    tm, tn = _choose_tiles(nc, hw, _sublane_multiple(x.dtype))
    grid = (pl.cdiv(nc, tm), pl.cdiv(hw, tn))

    out2d = pl.pallas_call(
        _normalize_kernel,
        out_shape=jax.ShapeDtypeStruct((nc, hw), jnp.float32),
        grid_spec=pltpu.PrefetchScalarGridSpec(
            num_scalar_prefetch=0,
            grid=grid,
            in_specs=[
                pl.BlockSpec((tm, tn), lambda i, j: (i, j)),
                pl.BlockSpec((tm, 1), lambda i, j: (i, 0)),
                pl.BlockSpec((tm, 1), lambda i, j: (i, 0)),
            ],
            out_specs=pl.BlockSpec((tm, tn), lambda i, j: (i, j)),
        ),
        compiler_params=pltpu.CompilerParams(
            dimension_semantics=("parallel", "parallel")),
    )(x2d, scale_rows, bias_rows)

    return out2d.reshape(n, c, h, w)


def _reference(x, mean, std):
    c = x.shape[1]
    m = jnp.asarray(mean, jnp.float32).reshape(1, c, 1, 1)
    inv = (1.0 / jnp.asarray(std, jnp.float32)).reshape(1, c, 1, 1)
    return (x.astype(jnp.float32) - m) * inv


if __name__ == "__main__":
    key = jax.random.PRNGKey(0)

    # Primary small case plus shapes that exercise multi-step grids and
    # ragged (non-divisible) tiles on both the row and lane axes.
    shapes = [
        (2, 3, 16, 16),     # single block (tm = N*C, tn = H*W)
        (4, 3, 128, 128),   # multi-step grid, ragged row axis (N*C=12, TM=8)
        (3, 3, 40, 30),     # ragged in both axes (N*C=9, H*W=1200)
    ]
    for shp in shapes:
        key, sub = jax.random.split(key)
        x = jax.random.uniform(sub, shp, dtype=jnp.float32)
        y = jax.block_until_ready(normalize(x))
        ref = _reference(x, IMAGENET_MEAN, IMAGENET_STD)
        assert y.shape == x.shape and y.dtype == jnp.float32
        err = float(jnp.max(jnp.abs(y - ref)))
        assert err < 1e-4, f"shape {shp}: max abs err {err}"

    print("KERNEL_OK")
</pallas_src>

<mosaic_0001>
module attributes {stable_mosaic.version = 11 : i64} {
  func.func @_normalize_kernel(%arg0: i32, %arg1: i32, %arg2: memref<6x256xf32, #tpu.memory_space<vmem>>, %arg3: memref<6x1xf32, #tpu.memory_space<vmem>>, %arg4: memref<6x1xf32, #tpu.memory_space<vmem>>, %arg5: memref<6x256xf32, #tpu.memory_space<vmem>>) attributes {dimension_semantics = [#tpu.dimension_semantics<parallel>, #tpu.dimension_semantics<parallel>], iteration_bounds = array<i64: 1, 1>, scalar_prefetch = 0 : i64, scratch_operands = 0 : i64, tpu.core_type = #tpu.core_type<tc>, window_params = [{transform_indices = @transform_0, window_bounds = array<i64: 6, 256>}, {transform_indices = @transform_1, window_bounds = array<i64: 6, 1>}, {transform_indices = @transform_2, window_bounds = array<i64: 6, 1>}, {transform_indices = @transform_3, window_bounds = array<i64: 6, 256>}]} {
    %c0 = arith.constant 0 : index
    %c0_0 = arith.constant 0 : index
    %0 = vector.load %arg2[%c0, %c0_0] : memref<6x256xf32, #tpu.memory_space<vmem>>, vector<6x256xf32>
    %c0_1 = arith.constant 0 : index
    %c0_2 = arith.constant 0 : index
    %1 = vector.load %arg3[%c0_1, %c0_2] : memref<6x1xf32, #tpu.memory_space<vmem>>, vector<6x1xf32>
    %2 = vector.broadcast %1 : vector<6x1xf32> to vector<6x256xf32>
    %3 = arith.mulf %0, %2 : vector<6x256xf32>
    %c0_3 = arith.constant 0 : index
    %c0_4 = arith.constant 0 : index
    %4 = vector.load %arg4[%c0_3, %c0_4] : memref<6x1xf32, #tpu.memory_space<vmem>>, vector<6x1xf32>
    %5 = vector.broadcast %4 : vector<6x1xf32> to vector<6x256xf32>
    %6 = arith.addf %3, %5 : vector<6x256xf32>
    %c0_5 = arith.constant 0 : index
    %c0_6 = arith.constant 0 : index
    %7 = vector.load %arg5[%c0_5, %c0_6] : memref<6x256xf32, #tpu.memory_space<vmem>>, vector<6x256xf32>
    tpu.vector_store %arg5[%c0_5, %c0_6], %6 {strides = array<i32>} : memref<6x256xf32, #tpu.memory_space<vmem>>, vector<6x256xf32>,
    return
  }
  func.func @transform_0(%arg0: i32, %arg1: i32) -> (i32, i32) {
    %c0_i32 = arith.constant 0 : i32
    return %arg0, %arg1 : i32, i32
  }
  func.func @transform_1(%arg0: i32, %arg1: i32) -> (i32, i32) {
    %c0_i32 = arith.constant 0 : i32
    %c0_i32_0 = arith.constant 0 : i32
    return %arg0, %c0_i32 : i32, i32
  }
  func.func @transform_2(%arg0: i32, %arg1: i32) -> (i32, i32) {
    %c0_i32 = arith.constant 0 : i32
    %c0_i32_0 = arith.constant 0 : i32
    return %arg0, %c0_i32 : i32, i32
  }
  func.func @transform_3(%arg0: i32, %arg1: i32) -> (i32, i32) {
    %c0_i32 = arith.constant 0 : i32
    return %arg0, %arg1 : i32, i32
  }
}

</mosaic_0001>

<bundles_post_ra>
// kernel: tpu_custom_call.1
= control target key start
LH: loop header
LB: loop body
LE: loop exit
PB: predicated region body
PF: predicated region fallthrough
CT: control target
= control target key end

     0   :  { %v76_v1 = vmov 0   ;;  %s122_s0 = inlined_call_operand.vmem [shape: f32[6,256], index: 0, kind: input, shape index: {}]   ;;  %s123_s1 = inlined_call_operand.vmem [shape: f32[6,1], index: 1, kind: input, shape index: {}]   ;;  %s124_s2 = inlined_call_operand.vmem [shape: f32[6,1], index: 2, kind: input, shape index: {}]   ;;  %s125_s3 = inlined_call_operand.hbm [shape: f32[6,256], index: 3, kind: output, shape index: {}]  }
   0x1   :  { %v17_v0 = vld [vmem:[%s123_s1] sm:$0x3f]  ;;  %51 = vset.pattern.permute.xlu0 %v76_v1 }
   0x2   :  { %8 = vsyncpa [#allocation3], 0  ;;  %20 = vperm.xlu0 %51, %v17_v0   ;;  %v25_v2 = vld [vmem:[%s124_s2] sm:$0x3f]  ;;  %v16_v5 = vld [vmem:[%s122_s0 + $0x8] sm:$0x3f] }
   0x3   :  { %v15_v4 = vld [vmem:[%s122_s0] sm:$0x3f]  ;;  %s77_s20 = smov [#allocation2]  }
   0x4   :  { %s41_s1 = sshll.u32 %s77_s20, 4  ;;  %s42_s1 = int_to_ptr.vmem [resolvable:$true] %s41_s1 }
   0x5   :  { %s52_s2 = scalar_lea.vmem %s42_s1, 256  ;;  %p57_p1 = scmp.lt.s32.totalorder %s42_s1, %s42_s1 }
   0x6   :  { %28 = vperm.xlu0 %51, %v25_v2   ;;  %p53_p0 = scmp.ne.s32.totalorder %s42_s1, %s52_s2  ;;  %p58_p2 = scmp.lt.s32.totalorder %s52_s2, %s52_s2 }
   0x8   :  { %p59_p3 = por %p58_p2, %p57_p1 }
   0xa   :  { %p60_p4 = pnand %p59_p3, %p53_p0 }
  0x81   :  { %v21_v3 = vpop.permute.xlu0 %20 }
  0x82   :  { %v23_v6 = vmul.f32 %v21_v3, %v15_v4  ;;  %v24_v7 = vmul.f32 %v21_v3, %v16_v5 }
  0x85   :  { %v29_v8 = vpop.permute.xlu0 %28 }
  0x86   :  { %v31_v9 = vadd.f32 %v29_v8, %v23_v6  ;;  %v32_v10 = vadd.f32 %v29_v8, %v24_v7 }
  0x88   :  { %33 = vst [vmem:[#allocation2] sm:$0x3f] %v31_v9  ;;  %34 = vst [vmem:[#allocation2 + $0x8] sm:$0x3f] %v32_v10 }
  0x89   :  { %63 = shalt.err (!%p60_p4)
}
  0x8a   :  { %s64_s0 = scalar_lea.hbm %s125_s3, 256 }
  0x8b   :  { %p65_p5 = scmp.ne.s32.totalorder %s125_s3, %s64_s0  ;;  %p68_p6 = scmp.lt.u32.totalorder %s64_s0, %s125_s3 }
  0x8d   :  { %p70_p7 = pnand %p68_p6, %p65_p5 }
  0x8f   :  { %73 = shalt.err (!%p70_p7)
}
  0x90   :  { %44 = dma.vmem_to_hbm [thread:$0]  %s42_s1, 256, %s125_s3, [#allocation3]  }
  0x91   :  { %74 = dma.done.wait [#allocation3], 256  }
  0x92   :  { %75 = vsyncadd [#allocation3], 4294967040 }
  0x93   :  { %48 = vsyncpa [#allocation3], 1 }

</bundles_post_ra>
